<compile_context>
chip_gen: v7x
topology: tpu7x:2x2x1
jax: 0.10.0
libtpu: 0.0.40
codegen_flags: <defaults>
</compile_context>

<pallas_src>
import functools
import math

import jax
import jax.numpy as jnp
from jax.experimental import pallas as pl
from jax.experimental.pallas import tpu as pltpu

_LANES = 128
_SUBLANES = 8
_TILE_ROWS_MAX = 1024  # 0.5 MiB f32 per block


def _round_up(n, m):
    return ((n + m - 1) // m) * m


# ---------------------------------------------------------------------------
# Pass 1: per-core elementwise running min of px into an (8,128) output block.
# grid = (ncores, n_inner); "parallel" core axis, "arbitrary" row-tile axis.
# ---------------------------------------------------------------------------
def _pxmin_kernel(px_ref, acc_ref, *, rows, tile_rows, n_inner, needs_row_mask):
    c = pl.program_id(0)   # core split (parallel)
    i = pl.program_id(1)   # row-tile loop (arbitrary, accumulator-resident)

    @pl.when(i == 0)
    def _():
        acc_ref[...] = jnp.full(acc_ref.shape, jnp.inf, acc_ref.dtype)

    px = px_ref[...]
    if needs_row_mask:
        # Mask rows beyond the real array (edge blocks of a cdiv grid read
        # unspecified data); +inf is the identity for min.
        row0 = (c * n_inner + i) * tile_rows
        row = jax.lax.broadcasted_iota(jnp.int32, px.shape, 0) + row0
        px = jnp.where(row < rows, px, jnp.inf)

    # (tile_rows,128) -> (tile_rows//8, 8, 128); min over the leading axis is
    # pure vreg-wise VPU work, keeping the running min in a vreg-shaped block.
    tile_min = jnp.min(px.reshape(tile_rows // _SUBLANES, _SUBLANES, _LANES), axis=0)
    acc_ref[...] = jnp.minimum(acc_ref[...], tile_min)


# ---------------------------------------------------------------------------
# Pass 2: out = x where px <= thr else 0   (thr scalar in SMEM)
# ---------------------------------------------------------------------------
def _mask_kernel(thr_ref, x_ref, px_ref, out_ref):
    thr = thr_ref[0, 0]
    keep = px_ref[...] <= thr
    out_ref[...] = jnp.where(keep, x_ref[...], 0.0).astype(out_ref.dtype)


def _as_slab(a, pad_value):
    """Reshape to (rows, 128). Zero-copy when numel % 128 == 0 (the common case)."""
    flat = a.reshape(-1)
    n = flat.shape[0]
    rem = n % _LANES
    if rem:
        # TODO(synk): rare fallback copy when numel isn't a multiple of 128; pad values
        # are chosen so they never perturb the result (px pad=1.0 -> hx=0, x pad=0.0).
        flat = jnp.concatenate(
            [flat, jnp.full((_LANES - rem,), pad_value, dtype=flat.dtype)]
        )
    return flat.reshape(-1, _LANES)


def dyna_enc(x, px):
    """x, px: (B, C, H, W) float32. Returns masked x, same shape/dtype."""
    assert x.shape == px.shape
    orig_shape = x.shape
    n_valid = math.prod(orig_shape)

    px2d = _as_slab(px, 1.0)
    x2d = _as_slab(x, 0.0)
    rows = px2d.shape[0]

    tile_rows = min(_TILE_ROWS_MAX, _round_up(rows, _SUBLANES))
    tiles_total = pl.cdiv(rows, tile_rows)
    needs_row_mask = (rows % tile_rows) != 0

    # v7x megacore: split the reduction across 2 TensorCores when it divides evenly.
    ncores = 2 if (tiles_total % 2 == 0 and tiles_total >= 2) else 1
    n_inner = tiles_total // ncores

    # --- pass 1: per-core partial elementwise min of px ------------------------
    partial_min = pl.pallas_call(
        functools.partial(
            _pxmin_kernel,
            rows=rows,
            tile_rows=tile_rows,
            n_inner=n_inner,
            needs_row_mask=needs_row_mask,
        ),
        out_shape=jax.ShapeDtypeStruct((ncores, _SUBLANES, _LANES), jnp.float32),
        grid=(ncores, n_inner),
        in_specs=[
            pl.BlockSpec((tile_rows, _LANES), lambda c, i: (c * n_inner + i, 0)),
        ],
        out_specs=pl.BlockSpec((None, _SUBLANES, _LANES), lambda c, i: (c, 0, 0)),
        compiler_params=pltpu.CompilerParams(
            dimension_semantics=("parallel", "arbitrary")
        ),
    )(px2d)

    # Tiny final reduce + threshold (monotonicity: max(hx) == hx(min(px))).
    #   px_min >= 1  <=>  eta == 0  <=>  keep everything  -> thr = +inf
    px_min = jnp.min(partial_min)
    thr = jnp.where(px_min >= 1.0, jnp.inf, px_min).astype(jnp.float32).reshape(1, 1)

    # --- pass 2: out = x * (px <= thr) ------------------------------------------
    out2d = pl.pallas_call(
        _mask_kernel,
        out_shape=jax.ShapeDtypeStruct(x2d.shape, x.dtype),
        grid=(tiles_total,),
        in_specs=[
            pl.BlockSpec(memory_space=pltpu.MemorySpace.SMEM),      # thr scalar
            pl.BlockSpec((tile_rows, _LANES), lambda i: (i, 0)),    # x tile
            pl.BlockSpec((tile_rows, _LANES), lambda i: (i, 0)),    # px tile
        ],
        out_specs=pl.BlockSpec((tile_rows, _LANES), lambda i: (i, 0)),
        compiler_params=pltpu.CompilerParams(dimension_semantics=("parallel",)),
    )(thr, x2d, px2d)

    return out2d.reshape(-1)[:n_valid].reshape(orig_shape)


if __name__ == "__main__":
    key = jax.random.PRNGKey(0)
    kx, kp = jax.random.split(key)

    B, C, H, W = 2, 4, 16, 16  # small NCHW shapes, consistent with the module
    x = jax.random.normal(kx, (B, C, H, W), dtype=jnp.float32)
    # px must be a probability-like positive tensor (log is taken in the reference)
    px = jax.random.uniform(
        kp, (B, C, H, W), dtype=jnp.float32, minval=1e-3, maxval=1.0
    )

    out = jax.block_until_ready(dyna_enc(x, px))

    # Pure-JAX reference (identical math to the torch module).
    hx = jnp.maximum(-jnp.log(px) / math.log(2.0), 0.0)
    eta = jnp.max(hx)
    ref = x * (hx >= eta).astype(x.dtype)

    assert out.shape == (B, C, H, W)
    assert out.dtype == x.dtype
    assert bool(jnp.all(jnp.isfinite(out)))
    assert bool(jnp.allclose(out, ref)), "kernel output mismatch vs reference"

    print("KERNEL_OK")
</pallas_src>

<mosaic_0001>
module attributes {stable_mosaic.version = 11 : i64} {
  func.func @_pxmin_kernel(%arg0: i32, %arg1: i32, %arg2: memref<16x128xf32, #tpu.memory_space<vmem>>, %arg3: memref<1x8x128xf32, #tpu.memory_space<vmem>>) attributes {dimension_semantics = [#tpu.dimension_semantics<parallel>, #tpu.dimension_semantics<arbitrary>], iteration_bounds = array<i64: 1, 1>, scalar_prefetch = 0 : i64, scratch_operands = 0 : i64, tpu.core_type = #tpu.core_type<tc>, window_params = [{transform_indices = @transform_0, window_bounds = array<i64: 16, 128>}, {transform_indices = @transform_1, window_bounds = array<i64: 1, 8, 128>}]} {
    %c0_i32 = arith.constant 0 : i32
    %0 = arith.cmpi eq, %arg1, %c0_i32 : i32
    %1 = arith.extui %0 : i1 to i32
    %c0_i32_0 = arith.constant 0 : i32
    %2 = arith.cmpi ne, %1, %c0_i32_0 : i32
    scf.if %2 {
      %cst_8 = arith.constant 0x7F800000 : f32
      %12 = vector.broadcast %cst_8 : f32 to vector<8x128xf32>
      %c0_9 = arith.constant 0 : index
      %c0_10 = arith.constant 0 : index
      %c0_11 = arith.constant 0 : index
      %13 = vector.load %arg3[%c0_9, %c0_10, %c0_11] : memref<1x8x128xf32, #tpu.memory_space<vmem>>, vector<1x8x128xf32>
      %14 = vector.shape_cast %13 : vector<1x8x128xf32> to vector<8x128xf32>
      %15 = vector.shape_cast %12 : vector<8x128xf32> to vector<1x8x128xf32>
      tpu.vector_store %arg3[%c0_9, %c0_10, %c0_11], %15 {strides = array<i32>} : memref<1x8x128xf32, #tpu.memory_space<vmem>>, vector<1x8x128xf32>,
    } else {
    }
    %c0 = arith.constant 0 : index
    %c0_1 = arith.constant 0 : index
    %3 = vector.load %arg2[%c0, %c0_1] : memref<16x128xf32, #tpu.memory_space<vmem>>, vector<16x128xf32>
    %4 = vector.shape_cast %3 : vector<16x128xf32> to vector<2x8x128xf32>
    %cst = arith.constant dense<0x7F800000> : vector<8x128xf32>
    %5 = vector.multi_reduction <minimumf>, %4, %cst [0] : vector<2x8x128xf32> to vector<8x128xf32>
    %c0_2 = arith.constant 0 : index
    %c0_3 = arith.constant 0 : index
    %c0_4 = arith.constant 0 : index
    %6 = vector.load %arg3[%c0_2, %c0_3, %c0_4] : memref<1x8x128xf32, #tpu.memory_space<vmem>>, vector<1x8x128xf32>
    %7 = vector.shape_cast %6 : vector<1x8x128xf32> to vector<8x128xf32>
    %8 = arith.minimumf %7, %5 : vector<8x128xf32>
    %c0_5 = arith.constant 0 : index
    %c0_6 = arith.constant 0 : index
    %c0_7 = arith.constant 0 : index
    %9 = vector.load %arg3[%c0_5, %c0_6, %c0_7] : memref<1x8x128xf32, #tpu.memory_space<vmem>>, vector<1x8x128xf32>
    %10 = vector.shape_cast %9 : vector<1x8x128xf32> to vector<8x128xf32>
    %11 = vector.shape_cast %8 : vector<8x128xf32> to vector<1x8x128xf32>
    tpu.vector_store %arg3[%c0_5, %c0_6, %c0_7], %11 {strides = array<i32>} : memref<1x8x128xf32, #tpu.memory_space<vmem>>, vector<1x8x128xf32>,
    return
  }
  func.func @transform_0(%arg0: i32, %arg1: i32) -> (i32, i32) {
    %c1_i32 = arith.constant 1 : i32
    %0 = arith.muli %arg0, %c1_i32 : i32
    %1 = arith.addi %0, %arg1 : i32
    %c0_i32 = arith.constant 0 : i32
    %c0_i32_0 = arith.constant 0 : i32
    return %1, %c0_i32 : i32, i32
  }
  func.func @transform_1(%arg0: i32, %arg1: i32) -> (i32, i32, i32) {
    %c0_i32 = arith.constant 0 : i32
    %c0_i32_0 = arith.constant 0 : i32
    %c0_i32_1 = arith.constant 0 : i32
    return %arg0, %c0_i32, %c0_i32_0 : i32, i32, i32
  }
}

</mosaic_0001>

<bundles_post_ra>
// kernel: tpu_custom_call.1
= control target key start
LH: loop header
LB: loop body
LE: loop exit
PB: predicated region body
PF: predicated region fallthrough
CT: control target
= control target key end

     0   :  { %6 = vsyncpa [#allocation3], 0  ;;  %s146_s0 = inlined_call_operand.hbm [shape: f32[16,128], index: 0, kind: input, shape index: {}]   ;;  %s147_s1 = inlined_call_operand.hbm [shape: f32[1,8,128], index: 1, kind: output, shape index: {}]  }
   0x1   :  { %7 = vsyncpa [#allocation4], 0  ;;  %s108_s6 = smov [#allocation2]   ;;  %s60_s10 = scalar_lea.hbm %s146_s0, 256 }
   0x2   :  { %s17_s7 = sshll.u32 %s108_s6, 4  ;;  %p61_p0 = scmp.ne.s32.totalorder %s146_s0, %s60_s10  ;;  %s18_s7 = int_to_ptr.vmem [resolvable:$true] %s17_s7 }
   0x3   :  { %p64_p1 = scmp.lt.u32.totalorder %s60_s10, %s146_s0 }
   0x5   :  { %p66_p2 = pnand %p64_p1, %p61_p0 }
   0x7   :  { %69 = shalt.err (!%p66_p2)
}
   0x8   :  { %s70_s15 = scalar_lea.vmem %s18_s7, 256  ;;  %p75_p4 = scmp.lt.s32.totalorder %s18_s7, %s18_s7 }
   0x9   :  { %p71_p3 = scmp.ne.s32.totalorder %s18_s7, %s70_s15  ;;  %p76_p5 = scmp.lt.s32.totalorder %s70_s15, %s70_s15 }
   0xb   :  { %p77_p6 = por %p76_p5, %p75_p4 }
   0xd   :  { %p78_p7 = pnand %p77_p6, %p71_p3 }
   0xf   :  { %81 = shalt.err (!%p78_p7)
}
  0x10   :  { %s109_s16 = smov 128   ;;  %s110_s17 = smov 8  }
  0x11   :  { %23 = dma.hbm_to_vmem [thread:$0]  %s146_s0, 256, %s18_s7, [#allocation3], %s109_s16, %s109_s16, %s110_s17  }
  0x12   :  { %104 = dma.done.wait [#allocation3], 256  }
  0x13   :  { %105 = vsyncadd [#allocation3], 4294967040  ;;  %v34_v0 = vld [vmem:[#allocation2] sm:$0xff]  ;;  %v35_v1 = vld [vmem:[#allocation2 + $0x8] sm:$0xff]  ;;  %s111_s20 = smov [#allocation5]  }
  0x14   :  { %s46_s21 = sshll.u32 %s111_s20, 4  ;;  %v36_v2 = vmin.f32 %v34_v0, %v35_v1  ;;  %s47_s21 = int_to_ptr.vmem [resolvable:$true] %s46_s21 }
  0x15   :  { %s82_s22 = scalar_lea.vmem %s47_s21, 128  ;;  %p87_p9 = scmp.lt.s32.totalorder %s47_s21, %s47_s21 }
  0x16   :  { %39 = vst [vmem:[#allocation5] sm:$0xff] %v36_v2  ;;  %p83_p8 = scmp.ne.s32.totalorder %s47_s21, %s82_s22  ;;  %p88_p10 = scmp.lt.s32.totalorder %s82_s22, %s82_s22 }
  0x18   :  { %p89_p11 = por %p88_p10, %p87_p9 }
  0x1a   :  { %p90_p12 = pnand %p89_p11, %p83_p8 }
  0x1c   :  { %93 = shalt.err (!%p90_p12)
}
  0x1d   :  { %s94_s0 = scalar_lea.hbm %s147_s1, 128 }
  0x1e   :  { %p95_p13 = scmp.ne.s32.totalorder %s147_s1, %s94_s0  ;;  %p98_p0 = scmp.lt.u32.totalorder %s94_s0, %s147_s1 }
  0x20   :  { %p100_p1 = pnand %p98_p0, %p95_p13 }
  0x22   :  { %103 = shalt.err (!%p100_p1)
}
  0x23   :  { %49 = dma.vmem_to_hbm [thread:$0]  %s47_s21, 128, %s147_s1, [#allocation4]  }
  0x24   :  { %106 = dma.done.wait [#allocation4], 128  }
  0x25   :  { %107 = vsyncadd [#allocation4], 4294967168 }
  0x26   :  { %53 = vsyncpa [#allocation3], 1 }
  0x27   :  { %54 = vsyncpa [#allocation4], 1 }

</bundles_post_ra>
